<compile_context>
chip_gen: v7x
topology: tpu7x:2x2x1
jax: 0.10.0
libtpu: 0.0.40
codegen_flags: <defaults>
</compile_context>

<pallas_src>
import functools

import jax
import jax.numpy as jnp
from jax import lax
from jax.experimental import pallas as pl
from jax.experimental.pallas import tpu as pltpu

LRELU_SLOPE = 0.1


def get_padding(kernel_size, dilation=1):
    return int((kernel_size * dilation - dilation) / 2)


def _round_up(v, m):
    return -(-v // m) * m


# ----------------------------------------------------------------------------
# Pallas kernel: fused (K,1) conv for one period-column and one Cout tile.
#   x_ref : (1, Hg, S*Cin_pad)  group-reshaped, zero-padded activation column
#   w_ref : (G, S*Cin_pad, tn)  group-reshaped weights (bf16 on the fast path)
#   b_ref : (1, tn)             bias (f32)
#   o_ref : (1, Hout_pad, tn)
#   out[ho, :] = bias + sum_g x[ho + g, :] @ w[g]   (optionally leaky_relu)
# ----------------------------------------------------------------------------
def _conv_kx1_kernel(x_ref, w_ref, b_ref, o_ref, *, G, Hout_pad, apply_lrelu,
                     compute_dtype):
    xb = x_ref[0].astype(compute_dtype)            # (Hg, SCin_pad)
    acc = jnp.zeros((Hout_pad, o_ref.shape[2]), jnp.float32)
    for g in range(G):                             # static unroll, G <= 5
        wg = w_ref[g].astype(compute_dtype)        # (SCin_pad, tn)
        acc = acc + jnp.dot(xb[g:g + Hout_pad], wg,
                            preferred_element_type=jnp.float32)
    y = acc + b_ref[...]
    if apply_lrelu:
        y = jnp.where(y >= 0, y, LRELU_SLOPE * y)
    o_ref[0] = y.astype(o_ref.dtype)


# ----------------------------------------------------------------------------
# Conv2d with kernel (K,1), stride (S,1), padding (P,0) on channels-last
# column layout:  x_cl (B*W, H, Cin)  ->  (B*W, Hout, Cout)
# ----------------------------------------------------------------------------
def conv2d_kx1(x_cl, wg, bias_p, *, K, S, P, Cout, apply_lrelu, compute_dtype):
    BW, H, Cin = x_cl.shape
    G = -(-K // S)
    SCin = S * Cin
    SCin_pad = wg.shape[1]
    Cout_pad = wg.shape[2]
    assert wg.shape[0] == G and SCin_pad == _round_up(SCin, 8)

    Hout = (H + 2 * P - K) // S + 1
    Hout_pad = _round_up(Hout, 8)
    Hg = _round_up(Hout_pad + G - 1, 8)
    pad_end = Hg * S - H - P
    assert pad_end >= 0
    xp = jnp.pad(x_cl, ((0, 0), (P, pad_end), (0, 0)))
    xg = xp.reshape(BW, Hg, SCin)              # free reshape: S rows per group
    if SCin_pad != SCin:
        xg = jnp.pad(xg, ((0, 0), (0, 0), (0, SCin_pad - SCin)))

    # Lane-dense Cout tiling: 256 for the deep layers, full (small) dim else.
    if Cout_pad % 256 == 0:
        tn = 256
    elif Cout_pad % 128 == 0:
        tn = 128
    else:
        tn = Cout_pad
    n_n = Cout_pad // tn

    kernel = functools.partial(_conv_kx1_kernel, G=G, Hout_pad=Hout_pad,
                               apply_lrelu=apply_lrelu,
                               compute_dtype=compute_dtype)
    out = pl.pallas_call(
        kernel,
        out_shape=jax.ShapeDtypeStruct((BW, Hout_pad, Cout_pad), jnp.float32),
        grid_spec=pltpu.PrefetchScalarGridSpec(
            num_scalar_prefetch=0,
            grid=(n_n, BW),                    # weight tile resident over BW
            in_specs=[
                pl.BlockSpec((1, Hg, SCin_pad), lambda n, bw: (bw, 0, 0)),
                pl.BlockSpec((G, SCin_pad, tn), lambda n, bw: (0, 0, n)),
                pl.BlockSpec((1, tn), lambda n, bw: (0, n)),
            ],
            out_specs=pl.BlockSpec((1, Hout_pad, tn), lambda n, bw: (bw, 0, n)),
        ),
        compiler_params=pltpu.CompilerParams(
            dimension_semantics=("parallel", "parallel")),
    )(xg, wg, bias_p)
    return out[:, :Hout, :Cout]


# ----------------------------------------------------------------------------
# One-time parameter preparation (pad + group-reshape + dtype cast)
# ----------------------------------------------------------------------------
def _prep_conv_weight(w, b, S, compute_dtype):
    """(Cout, Cin, K, 1) conv weight -> (G, round8(S*Cin), Cout_pad) matmul
    weight matching the group-reshaped activation layout."""
    Cout, Cin, K, _ = w.shape
    G = -(-K // S)
    Kp = G * S
    SCin = S * Cin
    SCin_pad = _round_up(SCin, 8)
    Cout_pad = _round_up(Cout, 8)
    w2 = jnp.pad(w[..., 0], ((0, 0), (0, 0), (0, Kp - K)))   # (Cout, Cin, Kp)
    wt = jnp.transpose(w2, (2, 1, 0))                        # (Kp, Cin, Cout)
    wgr = wt.reshape(G, S, Cin, Cout).reshape(G, SCin, Cout)
    wgr = jnp.pad(wgr, ((0, 0), (0, SCin_pad - SCin), (0, Cout_pad - Cout)))
    bp = jnp.pad(b, (0, Cout_pad - Cout)).astype(jnp.float32)
    return wgr.astype(compute_dtype), bp.reshape(1, Cout_pad)


def prepare_params(params, post_params, kernel_size=5, stride=3,
                   compute_dtype=jnp.bfloat16):
    pad = get_padding(kernel_size, 1)
    strides = [stride, stride, stride, stride, 1]
    pads = [pad, pad, pad, pad, 2]
    layers = []
    for (w, b), S, P in zip(params, strides, pads):
        Cout, _, K, _ = w.shape
        wg, bp = _prep_conv_weight(w, b, S, compute_dtype)
        layers.append(dict(wg=wg, bp=bp, K=K, S=S, P=P, Cout=Cout))
    wpost, bpost = post_params
    Cout, _, K, _ = wpost.shape
    wg, bp = _prep_conv_weight(wpost, bpost, 1, compute_dtype)
    post = dict(wg=wg, bp=bp, K=K, S=1, P=1, Cout=Cout)
    return layers, post


def init_params(key, kernel_size=5):
    # weight_norm at init gives weight == v, so plain deterministic init
    # reproduces the forward semantics exactly.
    specs = [(1, 32), (32, 128), (128, 512), (512, 1024), (1024, 1024)]
    params = []
    for cin, cout in specs:
        key, kw, kb = jax.random.split(key, 3)
        scale = 1.0 / jnp.sqrt(cin * kernel_size)
        w = jax.random.uniform(kw, (cout, cin, kernel_size, 1),
                               jnp.float32, -scale, scale)
        bias = jax.random.uniform(kb, (cout,), jnp.float32, -scale, scale)
        params.append((w, bias))
    key, kw, kb = jax.random.split(key, 3)
    scale = 1.0 / jnp.sqrt(1024 * 3)
    wpost = jax.random.uniform(kw, (1, 1024, 3, 1), jnp.float32, -scale, scale)
    bpost = jax.random.uniform(kb, (1,), jnp.float32, -scale, scale)
    return params, (wpost, bpost)


# ----------------------------------------------------------------------------
# DiscriminatorP forward
# ----------------------------------------------------------------------------
def _to_nchw(x_cl, b, period):
    BW, Hout, Cout = x_cl.shape
    return x_cl.reshape(b, period, Hout, Cout).transpose(0, 3, 2, 1)


def discriminator_p_forward(x, prepared, period, compute_dtype=jnp.bfloat16):
    layers, post = prepared
    b, c, t = x.shape
    if t % period != 0:
        n_pad = period - t % period
        x = jnp.pad(x, ((0, 0), (0, 0), (0, n_pad)), mode="reflect")
        t = t + n_pad
    H = t // period
    # NCHW (b, 1, H, period) -> channels-last period columns (b*period, H, 1)
    x_cl = (x.reshape(b, c, H, period).transpose(0, 3, 2, 1)
             .reshape(b * period, H, c))
    fmap = []
    for lp in layers:
        x_cl = conv2d_kx1(x_cl, lp["wg"], lp["bp"], K=lp["K"], S=lp["S"],
                          P=lp["P"], Cout=lp["Cout"], apply_lrelu=True,
                          compute_dtype=compute_dtype)
        fmap.append(_to_nchw(x_cl, b, period))
    x_cl = conv2d_kx1(x_cl, post["wg"], post["bp"], K=post["K"], S=post["S"],
                      P=post["P"], Cout=post["Cout"], apply_lrelu=False,
                      compute_dtype=compute_dtype)
    x_nchw = _to_nchw(x_cl, b, period)
    fmap.append(x_nchw)
    return x_nchw.reshape(b, -1), fmap            # torch.flatten(x, 1, -1)


# ----------------------------------------------------------------------------
# Pure-JAX reference (lax.conv) for the correctness check
# ----------------------------------------------------------------------------
def _ref_conv(x, w, bias, stride, pad):
    y = lax.conv_general_dilated(
        x, w, (stride, 1), ((pad, pad), (0, 0)),
        dimension_numbers=("NCHW", "OIHW", "NCHW"),
        precision=lax.Precision.HIGHEST)
    return y + bias[None, :, None, None]


def reference_forward(x, params, post_params, period, kernel_size=5, stride=3):
    fmap = []
    b, c, t = x.shape
    if t % period != 0:
        n_pad = period - t % period
        x = jnp.pad(x, ((0, 0), (0, 0), (0, n_pad)), mode="reflect")
        t = t + n_pad
    x = x.reshape(b, c, t // period, period)
    pad = get_padding(kernel_size, 1)
    strides = [stride, stride, stride, stride, 1]
    pads = [pad, pad, pad, pad, 2]
    for (w, bias), s, p in zip(params, strides, pads):
        x = _ref_conv(x, w, bias, s, p)
        x = jnp.where(x >= 0, x, LRELU_SLOPE * x)
        fmap.append(x)
    wpost, bpost = post_params
    x = _ref_conv(x, wpost, bpost, 1, 1)
    fmap.append(x)
    return x.reshape(b, -1), fmap


if __name__ == "__main__":
    key = jax.random.PRNGKey(0)
    kx, kp = jax.random.split(key)

    period = 4
    B, C, T = 2, 1, 46   # T % period != 0 -> exercises the reflect-pad branch
    x = jax.random.normal(kx, (B, C, T), jnp.float32)
    params, post_params = init_params(kp)

    ref_out, ref_fmap = reference_forward(x, params, post_params, period)
    ref_out = jax.block_until_ready(ref_out)

    # (1) exact-path check: f32 MXU operands, tight tolerance
    prep32 = prepare_params(params, post_params, compute_dtype=jnp.float32)
    out32, fmap32 = discriminator_p_forward(x, prep32, period,
                                            compute_dtype=jnp.float32)
    out32 = jax.block_until_ready(out32)
    assert out32.shape == ref_out.shape, (out32.shape, ref_out.shape)
    assert jnp.allclose(out32, ref_out, rtol=1e-4, atol=1e-4)
    for a, r in zip(fmap32, ref_fmap):
        assert a.shape == r.shape, (a.shape, r.shape)
        assert jnp.allclose(a, r, rtol=1e-4, atol=1e-4)

    # (2) fast path: bf16 MXU operands, f32 accumulation; scale-aware tolerance
    prep_bf16 = prepare_params(params, post_params, compute_dtype=jnp.bfloat16)
    out, fmap = discriminator_p_forward(x, prep_bf16, period,
                                        compute_dtype=jnp.bfloat16)
    out = jax.block_until_ready(out)
    jax.block_until_ready(fmap)

    def close(a, r, frac=0.1):
        scale = float(jnp.max(jnp.abs(r))) + 1e-6
        return float(jnp.max(jnp.abs(a - r))) <= frac * scale

    assert out.shape == ref_out.shape, (out.shape, ref_out.shape)
    assert close(out, ref_out)
    for a, r in zip(fmap, ref_fmap):
        assert a.shape == r.shape, (a.shape, r.shape)
        assert close(a, r)

    print("KERNEL_OK")
</pallas_src>

<mosaic_0001>
module attributes {stable_mosaic.version = 11 : i64} {
  func.func @_conv_kx1_kernel(%arg0: i32, %arg1: i32, %arg2: memref<1x16x8xf32, #tpu.memory_space<vmem>>, %arg3: memref<2x8x32xf32, #tpu.memory_space<vmem>>, %arg4: memref<1x32xf32, #tpu.memory_space<vmem>>, %arg5: memref<1x8x32xf32, #tpu.memory_space<vmem>>) attributes {dimension_semantics = [#tpu.dimension_semantics<parallel>, #tpu.dimension_semantics<parallel>], iteration_bounds = array<i64: 1, 8>, scalar_prefetch = 0 : i64, scratch_operands = 0 : i64, tpu.core_type = #tpu.core_type<tc>, window_params = [{transform_indices = @transform_0, window_bounds = array<i64: 1, 16, 8>}, {transform_indices = @transform_1, window_bounds = array<i64: 2, 8, 32>}, {transform_indices = @transform_2, window_bounds = array<i64: 1, 32>}, {transform_indices = @transform_3, window_bounds = array<i64: 1, 8, 32>}]} {
    %c0 = arith.constant 0 : index
    %c0_0 = arith.constant 0 : index
    %c0_1 = arith.constant 0 : index
    %0 = vector.load %arg2[%c0, %c0_0, %c0_1] : memref<1x16x8xf32, #tpu.memory_space<vmem>>, vector<1x16x8xf32>
    %1 = vector.shape_cast %0 : vector<1x16x8xf32> to vector<16x8xf32>
    %cst = arith.constant 0.000000e+00 : f32
    %2 = vector.broadcast %cst : f32 to vector<8x32xf32>
    %c0_2 = arith.constant 0 : index
    %c0_3 = arith.constant 0 : index
    %c0_4 = arith.constant 0 : index
    %3 = vector.load %arg3[%c0_2, %c0_3, %c0_4] : memref<2x8x32xf32, #tpu.memory_space<vmem>>, vector<1x8x32xf32>
    %4 = vector.shape_cast %3 : vector<1x8x32xf32> to vector<8x32xf32>
    %5 = vector.extract_strided_slice %1 {offsets = [0, 0], sizes = [8, 8], strides = [1, 1]} : vector<16x8xf32> to vector<8x8xf32>
    %cst_5 = arith.constant dense<0.000000e+00> : vector<8x32xf32>
    %6 = tpu.matmul %5, %4, %cst_5 {dimension_numbers = #tpu.dot_dimension_numbers<[1], [0], [0], [1], [0, 0, 1, 1], [], []>} : vector<8x8xf32>, vector<8x32xf32>, vector<8x32xf32> -> vector<8x32xf32>
    %7 = arith.addf %2, %6 : vector<8x32xf32>
    %c1 = arith.constant 1 : index
    %c0_6 = arith.constant 0 : index
    %c0_7 = arith.constant 0 : index
    %8 = vector.load %arg3[%c1, %c0_6, %c0_7] : memref<2x8x32xf32, #tpu.memory_space<vmem>>, vector<1x8x32xf32>
    %9 = vector.shape_cast %8 : vector<1x8x32xf32> to vector<8x32xf32>
    %10 = vector.extract_strided_slice %1 {offsets = [1, 0], sizes = [8, 8], strides = [1, 1]} : vector<16x8xf32> to vector<8x8xf32>
    %cst_8 = arith.constant dense<0.000000e+00> : vector<8x32xf32>
    %11 = tpu.matmul %10, %9, %cst_8 {dimension_numbers = #tpu.dot_dimension_numbers<[1], [0], [0], [1], [0, 0, 1, 1], [], []>} : vector<8x8xf32>, vector<8x32xf32>, vector<8x32xf32> -> vector<8x32xf32>
    %12 = arith.addf %7, %11 : vector<8x32xf32>
    %c0_9 = arith.constant 0 : index
    %c0_10 = arith.constant 0 : index
    %13 = vector.load %arg4[%c0_9, %c0_10] : memref<1x32xf32, #tpu.memory_space<vmem>>, vector<1x32xf32>
    %14 = vector.broadcast %13 : vector<1x32xf32> to vector<8x32xf32>
    %15 = arith.addf %12, %14 : vector<8x32xf32>
    %cst_11 = arith.constant 0.000000e+00 : f32
    %16 = vector.broadcast %cst_11 : f32 to vector<8x32xf32>
    %17 = arith.cmpf oge, %15, %16 : vector<8x32xf32>
    %cst_12 = arith.constant 1.000000e-01 : f32
    %18 = vector.broadcast %cst_12 : f32 to vector<8x32xf32>
    %19 = arith.mulf %18, %15 : vector<8x32xf32>
    %20 = arith.select %17, %15, %19 : vector<8x32xi1>, vector<8x32xf32>
    %c0_13 = arith.constant 0 : index
    %c0_14 = arith.constant 0 : index
    %c0_15 = arith.constant 0 : index
    %21 = vector.load %arg5[%c0_13, %c0_14, %c0_15] : memref<1x8x32xf32, #tpu.memory_space<vmem>>, vector<1x8x32xf32>
    %22 = vector.shape_cast %21 : vector<1x8x32xf32> to vector<8x32xf32>
    %23 = vector.shape_cast %20 : vector<8x32xf32> to vector<1x8x32xf32>
    tpu.vector_store %arg5[%c0_13, %c0_14, %c0_15], %23 {strides = array<i32>} : memref<1x8x32xf32, #tpu.memory_space<vmem>>, vector<1x8x32xf32>,
    return
  }
  func.func @transform_0(%arg0: i32, %arg1: i32) -> (i32, i32, i32) {
    %c0_i32 = arith.constant 0 : i32
    %c0_i32_0 = arith.constant 0 : i32
    %c0_i32_1 = arith.constant 0 : i32
    return %arg1, %c0_i32, %c0_i32_0 : i32, i32, i32
  }
  func.func @transform_1(%arg0: i32, %arg1: i32) -> (i32, i32, i32) {
    %c0_i32 = arith.constant 0 : i32
    %c0_i32_0 = arith.constant 0 : i32
    %c0_i32_1 = arith.constant 0 : i32
    return %c0_i32, %c0_i32_0, %arg0 : i32, i32, i32
  }
  func.func @transform_2(%arg0: i32, %arg1: i32) -> (i32, i32) {
    %c0_i32 = arith.constant 0 : i32
    %c0_i32_0 = arith.constant 0 : i32
    return %c0_i32, %arg0 : i32, i32
  }
  func.func @transform_3(%arg0: i32, %arg1: i32) -> (i32, i32, i32) {
    %c0_i32 = arith.constant 0 : i32
    %c0_i32_0 = arith.constant 0 : i32
    return %arg1, %c0_i32, %arg0 : i32, i32, i32
  }
}

</mosaic_0001>

<bundles_post_ra>
// kernel: tpu_custom_call.1
= control target key start
LH: loop header
LB: loop body
LE: loop exit
PB: predicated region body
PF: predicated region fallthrough
CT: control target
= control target key end

     0   :  { %8 = vsyncpa [#allocation3], 0  ;;  %s807_s0 = inlined_call_operand.vmem [shape: f32[8,16,8], index: 0, kind: input, shape index: {}]   ;;  %s808_s1 = inlined_call_operand.vmem [shape: f32[2,8,32], index: 1, kind: input, shape index: {}]   ;;  %s809_s2 = inlined_call_operand.vmem [shape: f32[1,32], index: 2, kind: input, shape index: {}]   ;;  %s810_s3 = inlined_call_operand.hbm [shape: f32[8,8,32], index: 3, kind: output, shape index: {}]  }
   0x1   :  { %10 = vsyncpa [#allocation3 + $0x1], 0  ;;  %s686_s12 = smov 0   ;;  %s688_s13 = smov 0  }
   0x2   :  { %s690_s14 = smov 0   ;;  %s692_s15 = smov 0  }
   0x3   :  { %s694_s16 = smov 0   ;;  %s696_s17 = smov 0  }
   0x4 LB: > { %s493_s18 = sadd.s32 4294967295, %s661_s17   ;;  %s494_s19 = sadd.s32 4294967294, %s661_s17   ;;  %s661_s17 = sphi %s696_s17, %s16_s17   ;;  %s657_s16 = sphi %s694_s16, %s817_s16   ;;  %s653_s15 = sphi %s692_s15, %s816_s15   ;;  %s649_s14 = sphi %s690_s14, %s815_s14   ;;  %s645_s13 = sphi %s688_s13, %s814_s13   ;;  %s641_s12 = sphi %s686_s12, %s813_s12  }
   0x5   : > { %s25_s20 = sadd.s32 1, %s657_s16  ;;  %s115_s21 = sadd.s32 1, %s649_s14 }
   0x6   : > { %p26_p0 = scmp.ge.s32.totalorder %s25_s20, 8  ;;  %p125_p1 = scmp.ne.s32.totalorder %s649_s14, %s645_s13 }
   0x7   : > { %p126_p2 = scmp.eq.s32.totalorder %s493_s18, 7  ;;  %p131_p3 = scmp.ne.s32.totalorder %s645_s13, %s641_s12 }
   0x8   : > { %s819_s20 = smov (%p26_p0, %s25_s20), 0  ;;  %p132_p5 = scmp.eq.s32.totalorder %s494_s19, 7 }
   0x9   : > { %p726_p4 = por %p126_p2, %p125_p1  ;;  %s110_s23 = ssub.s32 %s657_s16, %s819_s20 }
   0xa   : > { %p499_p6 = scmp.ge.s32.totalorder %s661_s17, 1  ;;  %p113_p7 = scmp.eq.s32.totalorder %s110_s23, 0 }
   0xb   : > { %p733_p8 = por %p132_p5, %p131_p3  ;;  %p171_p9 = scmp.lt.s32.totalorder %s661_s17, 9 }
   0xc   : > { %s739_s25 = scalar_select %p113_p7, %s649_s14, %s115_s21  }
   0xd   : > { %p172_p10 = pnand %p499_p6, %p171_p9 }
   0xe   : > { %v216_v0 = vld [vmem:[%s808_s1] sm:$0xff] (!%p172_p10)  ;;  %v503_v1 = vld [vmem:[%s808_s1 + $0x8] sm:$0xff] (!%p172_p10)  ;;  %p202_p11 = scmp.lt.s32.totalorder (!%p172_p10), %s653_s15, 7  ;;  %v663_v2 = vmov (!%p172_p10), 0.0   ;;  %vm664_vm0 = vmmov (!%p172_p10), 0   ;;  %vm225_vm1 = vcmask (!%p172_p10), 64512  }
   0xf   : > { %175 = sbr.rel (%p172_p10) target bundleno = 263 (0x107), region = 32  ;;  %521 = vmatprep.subr.mxu1 (!%p172_p10), %v663_v2  ;;  %516 = vmatprep.subr.mxu0 (!%p172_p10), %v663_v2  ;;  %vm221_vm2 = vcmask (!%p172_p10), 1046528   ;;  %s199_s8 = sand.u32 (!%p172_p10), 1, %s645_s13   ;;  %v506_v11 = vld [vmem:[%s809_s2] ss:$0 sm:$0xff] (!%p172_p10)  ;;  %vm381_vm4 = vcmask (!%p172_p10), 261120  }
  0x10   : > { %522 = vmatpush3.msra.mxu1 (!%p172_p10), %v216_v0  ;;  %523 = vmatprep.mubr.msk.f32.mxu1 (!%p172_p10), %vm664_vm0, %v663_v2  ;;  %s500_s9 = sshll.u32 (!%p172_p10), %s199_s8, 3  ;;  %s508_s18 = sshll.u32 (!%p172_p10), %s653_s15, 7 }
  0x11   : > { %517 = vmatpush3.msra.mxu0 (!%p172_p10), %v503_v1  ;;  %518 = vmatprep.mubr.msk.f32.mxu0 (!%p172_p10), %vm664_vm0, %v663_v2  ;;  %s201_s19 = scalar_lea.vmem (!%p172_p10), [#allocation2], %s500_s9  ;;  %s760_s27 = scalar_lea.hbm (!%p172_p10), %s810_s3, %s508_s18 }
  0x12   : > { %s398_s21 = sshll.u32 (!%p172_p10), %s201_s19, 4  ;;  %s384_s28 = scalar_lea.sflag (!%p172_p10), [#allocation3], %s199_s8  ;;  %s762_s21 = int_to_ptr.vmem [resolvable:$true] %s398_s21 }
  0x13   : > { %s583_s29 = scalar_lea.vmem (!%p172_p10), %s762_s21, 128 }
  0x14   : > { %p584_p12 = scmp.ne.s32.totalorder (!%p172_p10), %s762_s21, %s583_s29 }
  0x16   : > { %s203_s30 = scalar_select %p202_p11, %s653_s15, 7 }
  0x17   : > { %p585_p13 = pnand %p584_p12, %p726_p4  ;;  %s665_s15 = smov [#allocation2]  }
  0x18   : > { %s511_s4 = sshll.u32 %s203_s30, 4  ;;  %s587_s30 = sshll.u32 %s665_s15, 4  ;;  %s588_s30 = int_to_ptr.vmem [resolvable:$false] %s587_s30 }
  0x19   : > { %s206_s7 = scalar_lea.vmem %s807_s0, %s511_s4  ;;  %p586_p0 = pneg %p585_p13 }
  0x1a   : > { %v214_v3 = vld [vmem:[%s206_s7] sm:$0xff]  ;;  %v215_v4 = vld [vmem:[%s206_s7 + $0x8] sm:$0xff]  ;;  %s589_s4 = scalar_lea.vmem %s588_s30, 256  ;;  %p590_p1 = scmp.lt.s32.totalorder %s762_s21, %s588_s30 }
  0x1b   : > { %v222_v5 = vrot.slane %v214_v3, 1  ;;  %v223_v6 = vrot.slane %v215_v4, 1  ;;  %524 = vmatmul.mubr.msk.f32.vlgmr.msra.gmra.mrb[0].mxu1 %vm225_vm1, %v214_v3  ;;  %p591_p2 = scmp.lt.s32.totalorder %s589_s4, %s583_s29 }
  0x1d   : > { %v224_v7 = vsel %vm221_vm2, %v222_v5, %v223_v6  ;;  %p592_p3 = por %p591_p2, %p590_p1 }
  0x1e   : > { %519 = vmatmul.mubr.msk.f32.vlgmr.msra.gmra.mrb[0].mxu0 %vm225_vm1, %v224_v7 }
  0x1f   : > { %p593_p5 = pnand %p592_p3, %p586_p0 }
  0xee   : > { %v366_v8 = vpop.f32.mrb[0].mxu1 }
  0xef   : > { %v525_v9 = vpop.f32.mrb[1].mxu1 }
  0xf1   : > { %v294_v10 = vpop.f32.mrb[0].mxu0 }
  0xf2   : > { %v367_v12 = vadd.f32 %v366_v8, %v294_v10  ;;  %v520_v13 = vpop.f32.mrb[1].mxu0 }
  0xf4   : > { %v377_v14 = vadd.f32 %v506_v11, %v367_v12 }
  0xf6   : > { %vm378_vm3 = vcmp.ge.f32.partialorder %v377_v14, 0.0  ;;  %v379_v15 = vmul.f32 0.1, %v377_v14 }
  0xf8   : > { %v380_v16 = vsel %vm378_vm3, %v377_v14, %v379_v15 }
  0xf9   : > { %382 = vst.msk [vmem:[%s201_s19] sm:$0xff] %vm381_vm4, %v380_v16 }
  0xfa   : > { %596 = shalt.err (!%p593_p5)
}
  0xfb   : > { %s597_s5 = scalar_lea.hbm %s760_s27, 128  ;;  %s601_s8 = scalar_lea.hbm %s810_s3, 1024 }
  0xfc   : > { %p598_p6 = scmp.ne.s32.totalorder %s760_s27, %s597_s5  ;;  %p602_p10 = scmp.lt.u32.totalorder %s760_s27, %s810_s3 }
  0xfd   : > { %p603_p11 = scmp.lt.u32.totalorder %s601_s8, %s597_s5  ;;  %p605_p13 = scmp.lt.u32.totalorder %s597_s5, %s760_s27 }
  0xfe   : > { %p599_p7 = pnand %p598_p6, %p726_p4 }
  0xff   : > { %p604_p12 = por %p603_p11, %p602_p10 }
 0x100   : > { %p600_p9 = pneg %p599_p7 }
 0x101   : > { %p606_p0 = por %p605_p13, %p604_p12 }
 0x103   : > { %p607_p1 = pnand %p606_p0, %p600_p9 }
 0x105   : > { %610 = shalt.err (!%p607_p1)
}
 0x106   : > { %526 = dma.vmem_to_hbm [thread:$0]  (%p726_p4), %s762_s21, 128, %s760_s27, %s384_s28  }
 0x107 PF: > { %p532_p2 = scmp.ge.s32.totalorder %s661_s17, 2  ;;  %s410_s11 = sand.u32 1, %s641_s12  }
 0x108   : > { %s411_s18 = scalar_lea.sflag [#allocation3], %s410_s11 }
 0x109   : > { %p529_p3 = pnand %p532_p2, %p733_p8 }
 0x10b   : > { %636 = dma.done.wait (!%p529_p3), %s411_s18, 128  }
 0x10c   : > { %638 = vsyncadd (!%p529_p3), %s411_s18, 4294967168  ;;  %s16_s17 = sadd.s32 1, %s661_s17   ;;  %s813_s12 = smov %s645_s13 }
 0x10d   : > { %p13_p5 = scmp.ge.s32.totalorder %s16_s17, 10   ;;  %s814_s13 = smov %s649_s14 }
 0x10e   : > { %s815_s14 = smov %s739_s25  ;;  %s816_s15 = smov %s657_s16 }
 0x10f   : > { %s817_s16 = smov %s819_s20  ;;  %15 = sbr.rel (!%p13_p5) target bundleno = 4 (0x4), region = 74 }
 0x116   :  { %416 = vsyncpa [#allocation3], 1 }
 0x117   :  { %418 = vsyncpa [#allocation3 + $0x1], 1 }

</bundles_post_ra>
